<compile_context>
chip_gen: v7x
topology: tpu7x:2x2x1
jax: 0.10.0
libtpu: 0.0.40
codegen_flags: <defaults>
</compile_context>

<pallas_src>
import jax
import jax.numpy as jnp
from jax.experimental import pallas as pl
from jax.experimental.pallas import tpu as pltpu

EPS = 1e-5


def _round_up(n, m):
    return ((n + m - 1) // m) * m


def mlp_kernel(xt_ref, w1t_ref, b1_ref, w2t_ref, b2_ref, w3t_ref, b3_ref,
               o_ref):
    """Feature-major fused MLP: every intermediate is (features, TM),
    lane-dense along the batch-tile axis."""
    # ---- Layer 1: (64, in) @ (in, TM) -> (64, TM) + ReLU (BN1 folded fwd) --
    h1 = jnp.dot(w1t_ref[...], xt_ref[...],
                 preferred_element_type=jnp.float32) + b1_ref[...]
    h1 = jnp.maximum(h1, 0.0).astype(jnp.bfloat16)

    # ---- Layer 2: (32, 64) @ (64, TM) -> (32, TM) + ReLU (BN2 folded fwd) --
    h2 = jnp.dot(w2t_ref[...], h1,
                 preferred_element_type=jnp.float32) + b2_ref[...]
    h2 = jnp.maximum(h2, 0.0).astype(jnp.bfloat16)

    # ---- Head: (1, 32) @ (32, TM) -> lane-dense (1, TM) row --------------
    o_ref[...] = jnp.dot(w3t_ref[...], h2,
                         preferred_element_type=jnp.float32) + b3_ref[...]


def mlp_regressor_forward(x, params, *, tm_max=16384):
    batch, input_dim = x.shape
    f32 = jnp.float32
    bf16 = jnp.bfloat16

    # ---- Fold eval-mode BatchNorm1d into the following Linear (exact). ----
    s1 = params["g1"] * jax.lax.rsqrt(params["v1"] + EPS)       # (1, 64)
    t1 = params["be1"] - params["m1"] * s1                       # (1, 64)
    s2 = params["g2"] * jax.lax.rsqrt(params["v2"] + EPS)       # (1, 32)
    t2 = params["be2"] - params["m2"] * s2                       # (1, 32)

    # Feature-major (transposed) weight layout.
    w1t = params["w1"].T.astype(bf16)                            # (64, in)
    b1c = params["b1"].T.astype(f32)                             # (64, 1)
    w2t = (s1.T * params["w2"]).T.astype(bf16)                   # (32, 64)
    b2c = (params["b2"] + t1 @ params["w2"]).T.astype(f32)       # (32, 1)
    w3t = (s2.T * params["w3"]).T.astype(bf16)                   # (1, 32)
    b3 = (params["b3"] + t2 @ params["w3"]).astype(f32)          # (1, 1)

    h1d = w1t.shape[0]
    h2d = w2t.shape[0]

    # ---- Batch tiling: TM multiple of 128 (unmasked output stores), and
    # capped so grid >= 2 when the batch allows it (both v7x TCs busy). ----
    tm_cap = max(128, _round_up(tm_max, 128))
    tm = min(tm_cap, _round_up(max(pl.cdiv(batch, 2), 1), 128))
    padded = _round_up(batch, tm)
    grid = padded // tm

    x_bf = x.astype(bf16)
    if padded != batch:
        x_bf = jnp.pad(x_bf, ((0, padded - batch), (0, 0)))
    xt = x_bf.T                                                  # (in, padded)

    out = pl.pallas_call(
        mlp_kernel,
        out_shape=jax.ShapeDtypeStruct((1, padded), f32),
        grid=(grid,),
        in_specs=[
            pl.BlockSpec((input_dim, tm), lambda i: (0, i)),    # x^T: streamed
            pl.BlockSpec((h1d, input_dim), lambda i: (0, 0)),   # W1^T: resident
            pl.BlockSpec((h1d, 1), lambda i: (0, 0)),           # b1 column
            pl.BlockSpec((h2d, h1d), lambda i: (0, 0)),         # W2'^T (BN1 folded)
            pl.BlockSpec((h2d, 1), lambda i: (0, 0)),           # b2' column
            pl.BlockSpec((1, h2d), lambda i: (0, 0)),           # w3'^T (BN2 folded)
            pl.BlockSpec((1, 1), lambda i: (0, 0)),             # b3'
        ],
        out_specs=pl.BlockSpec((1, tm), lambda i: (0, i)),
        compiler_params=pltpu.CompilerParams(
            dimension_semantics=("parallel",),
            vmem_limit_bytes=48 * 1024 * 1024),
    )(xt, w1t, b1c, w2t, b2c, w3t, b3)

    return out.reshape(padded)[:batch].reshape(batch, 1)


def init_params(key, input_dim, hidden_dims=(64, 32)):
    """Deterministic init mimicking PyTorch Linear default (U(-1/sqrt(fan_in), ..))."""
    params = {}
    dims = [input_dim] + list(hidden_dims)
    keys = jax.random.split(key, 16)
    ki = 0
    for li, (din, dout) in enumerate(zip(dims[:-1], dims[1:]), start=1):
        bound = 1.0 / jnp.sqrt(float(din))
        params[f"w{li}"] = jax.random.uniform(
            keys[ki], (din, dout), jnp.float32, -bound, bound); ki += 1
        params[f"b{li}"] = jax.random.uniform(
            keys[ki], (1, dout), jnp.float32, -bound, bound); ki += 1
        # BatchNorm1d affine params + running stats (perturbed so the test is
        # non-trivial).
        params[f"g{li}"] = jnp.ones((1, dout), jnp.float32)
        params[f"be{li}"] = jnp.zeros((1, dout), jnp.float32)
        params[f"m{li}"] = 0.1 * jax.random.normal(
            keys[ki], (1, dout), jnp.float32); ki += 1
        params[f"v{li}"] = 1.0 + 0.1 * jax.random.uniform(
            keys[ki], (1, dout), jnp.float32); ki += 1
    din = dims[-1]
    bound = 1.0 / jnp.sqrt(float(din))
    params["w3"] = jax.random.uniform(
        keys[ki], (din, 1), jnp.float32, -bound, bound); ki += 1
    params["b3"] = jax.random.uniform(
        keys[ki], (1, 1), jnp.float32, -bound, bound); ki += 1
    return params


def mlp_regressor_ref(x, p):
    """Pure-JAX f32 reference (eval-mode forward, unfolded BatchNorm)."""
    h = jnp.maximum(x @ p["w1"] + p["b1"], 0.0)
    h = (h - p["m1"]) * (p["g1"] / jnp.sqrt(p["v1"] + EPS)) + p["be1"]
    h = jnp.maximum(h @ p["w2"] + p["b2"], 0.0)
    h = (h - p["m2"]) * (p["g2"] / jnp.sqrt(p["v2"] + EPS)) + p["be2"]
    return h @ p["w3"] + p["b3"]


if __name__ == "__main__":
    key = jax.random.PRNGKey(0)
    k_x, k_p, k_x2 = jax.random.split(key, 3)

    batch, input_dim = 8, 16
    x = jax.random.normal(k_x, (batch, input_dim), jnp.float32)
    params = init_params(k_p, input_dim, hidden_dims=(64, 32))

    # Single-tile path (small batch padded up to one 128-lane tile).
    out = jax.block_until_ready(mlp_regressor_forward(x, params))
    ref = mlp_regressor_ref(x, params)
    assert out.shape == (batch, 1), out.shape
    assert jnp.allclose(out, ref, atol=3e-2, rtol=3e-2), (
        "Pallas output diverges from reference (small batch): "
        f"max abs err {float(jnp.max(jnp.abs(out - ref)))}")

    # Multi-tile grid path with a ragged batch (exercises padding, multiple
    # grid steps, and constant index_maps keeping the weights VMEM-resident).
    batch2 = 300
    x2 = jax.random.normal(k_x2, (batch2, input_dim), jnp.float32)
    out2 = jax.block_until_ready(mlp_regressor_forward(x2, params, tm_max=128))
    ref2 = mlp_regressor_ref(x2, params)
    assert out2.shape == (batch2, 1), out2.shape
    assert jnp.allclose(out2, ref2, atol=3e-2, rtol=3e-2), (
        "Pallas output diverges from reference (gridded batch): "
        f"max abs err {float(jnp.max(jnp.abs(out2 - ref2)))}")

    print("KERNEL_OK")
</pallas_src>

<mosaic_0001>
module attributes {stable_mosaic.version = 11 : i64} {
  func.func @mlp_kernel(%arg0: i32, %arg1: memref<16x128xbf16, #tpu.memory_space<vmem>>, %arg2: memref<64x16xbf16, #tpu.memory_space<vmem>>, %arg3: memref<64x1xf32, #tpu.memory_space<vmem>>, %arg4: memref<32x64xbf16, #tpu.memory_space<vmem>>, %arg5: memref<32x1xf32, #tpu.memory_space<vmem>>, %arg6: memref<1x32xbf16, #tpu.memory_space<vmem>>, %arg7: memref<1x1xf32, #tpu.memory_space<vmem>>, %arg8: memref<1x128xf32, #tpu.memory_space<vmem>>) attributes {dimension_semantics = [#tpu.dimension_semantics<parallel>], iteration_bounds = array<i64: 1>, scalar_prefetch = 0 : i64, scratch_operands = 0 : i64, tpu.core_type = #tpu.core_type<tc>, window_params = [{transform_indices = @transform_0, window_bounds = array<i64: 16, 128>}, {pipeline_mode = #tpu.pipeline_mode<synchronous>, transform_indices = @transform_1, window_bounds = array<i64: 64, 16>}, {pipeline_mode = #tpu.pipeline_mode<synchronous>, transform_indices = @transform_2, window_bounds = array<i64: 64, 1>}, {pipeline_mode = #tpu.pipeline_mode<synchronous>, transform_indices = @transform_3, window_bounds = array<i64: 32, 64>}, {pipeline_mode = #tpu.pipeline_mode<synchronous>, transform_indices = @transform_4, window_bounds = array<i64: 32, 1>}, {pipeline_mode = #tpu.pipeline_mode<synchronous>, transform_indices = @transform_5, window_bounds = array<i64: 1, 32>}, {pipeline_mode = #tpu.pipeline_mode<synchronous>, transform_indices = @transform_6, window_bounds = array<i64: 1, 1>}, {transform_indices = @transform_7, window_bounds = array<i64: 1, 128>}]} {
    %c0 = arith.constant 0 : index
    %c0_0 = arith.constant 0 : index
    %0 = vector.load %arg2[%c0, %c0_0] : memref<64x16xbf16, #tpu.memory_space<vmem>>, vector<64x16xbf16>
    %c0_1 = arith.constant 0 : index
    %c0_2 = arith.constant 0 : index
    %1 = vector.load %arg1[%c0_1, %c0_2] : memref<16x128xbf16, #tpu.memory_space<vmem>>, vector<16x128xbf16>
    %cst = arith.constant dense<0.000000e+00> : vector<64x128xf32>
    %2 = tpu.matmul %0, %1, %cst {dimension_numbers = #tpu.dot_dimension_numbers<[1], [0], [0], [1], [0, 0, 1, 1], [], []>} : vector<64x16xbf16>, vector<16x128xbf16>, vector<64x128xf32> -> vector<64x128xf32>
    %c0_3 = arith.constant 0 : index
    %c0_4 = arith.constant 0 : index
    %3 = vector.load %arg3[%c0_3, %c0_4] : memref<64x1xf32, #tpu.memory_space<vmem>>, vector<64x1xf32>
    %4 = vector.broadcast %3 : vector<64x1xf32> to vector<64x128xf32>
    %5 = arith.addf %2, %4 : vector<64x128xf32>
    %cst_5 = arith.constant 0.000000e+00 : f32
    %6 = vector.broadcast %cst_5 : f32 to vector<64x128xf32>
    %7 = arith.maximumf %5, %6 : vector<64x128xf32>
    %8 = arith.truncf %7 : vector<64x128xf32> to vector<64x128xbf16>
    %c0_6 = arith.constant 0 : index
    %c0_7 = arith.constant 0 : index
    %9 = vector.load %arg4[%c0_6, %c0_7] : memref<32x64xbf16, #tpu.memory_space<vmem>>, vector<32x64xbf16>
    %cst_8 = arith.constant dense<0.000000e+00> : vector<32x128xf32>
    %10 = tpu.matmul %9, %8, %cst_8 {dimension_numbers = #tpu.dot_dimension_numbers<[1], [0], [0], [1], [0, 0, 1, 1], [], []>} : vector<32x64xbf16>, vector<64x128xbf16>, vector<32x128xf32> -> vector<32x128xf32>
    %c0_9 = arith.constant 0 : index
    %c0_10 = arith.constant 0 : index
    %11 = vector.load %arg5[%c0_9, %c0_10] : memref<32x1xf32, #tpu.memory_space<vmem>>, vector<32x1xf32>
    %12 = vector.broadcast %11 : vector<32x1xf32> to vector<32x128xf32>
    %13 = arith.addf %10, %12 : vector<32x128xf32>
    %cst_11 = arith.constant 0.000000e+00 : f32
    %14 = vector.broadcast %cst_11 : f32 to vector<32x128xf32>
    %15 = arith.maximumf %13, %14 : vector<32x128xf32>
    %16 = arith.truncf %15 : vector<32x128xf32> to vector<32x128xbf16>
    %c0_12 = arith.constant 0 : index
    %c0_13 = arith.constant 0 : index
    %17 = vector.load %arg6[%c0_12, %c0_13] : memref<1x32xbf16, #tpu.memory_space<vmem>>, vector<1x32xbf16>
    %cst_14 = arith.constant dense<0.000000e+00> : vector<1x128xf32>
    %18 = tpu.matmul %17, %16, %cst_14 {dimension_numbers = #tpu.dot_dimension_numbers<[1], [0], [0], [1], [0, 0, 1, 1], [], []>} : vector<1x32xbf16>, vector<32x128xbf16>, vector<1x128xf32> -> vector<1x128xf32>
    %c0_15 = arith.constant 0 : index
    %c0_16 = arith.constant 0 : index
    %19 = vector.load %arg7[%c0_15, %c0_16] : memref<1x1xf32, #tpu.memory_space<vmem>>, vector<1x1xf32>
    %20 = vector.broadcast %19 : vector<1x1xf32> to vector<1x128xf32>
    %21 = arith.addf %18, %20 : vector<1x128xf32>
    %c0_17 = arith.constant 0 : index
    %c0_18 = arith.constant 0 : index
    %22 = vector.load %arg8[%c0_17, %c0_18] : memref<1x128xf32, #tpu.memory_space<vmem>>, vector<1x128xf32>
    tpu.vector_store %arg8[%c0_17, %c0_18], %21 {strides = array<i32>} : memref<1x128xf32, #tpu.memory_space<vmem>>, vector<1x128xf32>,
    return
  }
  func.func @transform_0(%arg0: i32) -> (i32, i32) {
    %c0_i32 = arith.constant 0 : i32
    %c0_i32_0 = arith.constant 0 : i32
    return %c0_i32, %arg0 : i32, i32
  }
  func.func @transform_1(%arg0: i32) -> (i32, i32) {
    %c0_i32 = arith.constant 0 : i32
    %c0_i32_0 = arith.constant 0 : i32
    %c0_i32_1 = arith.constant 0 : i32
    return %c0_i32, %c0_i32_0 : i32, i32
  }
  func.func @transform_2(%arg0: i32) -> (i32, i32) {
    %c0_i32 = arith.constant 0 : i32
    %c0_i32_0 = arith.constant 0 : i32
    %c0_i32_1 = arith.constant 0 : i32
    return %c0_i32, %c0_i32_0 : i32, i32
  }
  func.func @transform_3(%arg0: i32) -> (i32, i32) {
    %c0_i32 = arith.constant 0 : i32
    %c0_i32_0 = arith.constant 0 : i32
    %c0_i32_1 = arith.constant 0 : i32
    return %c0_i32, %c0_i32_0 : i32, i32
  }
  func.func @transform_4(%arg0: i32) -> (i32, i32) {
    %c0_i32 = arith.constant 0 : i32
    %c0_i32_0 = arith.constant 0 : i32
    %c0_i32_1 = arith.constant 0 : i32
    return %c0_i32, %c0_i32_0 : i32, i32
  }
  func.func @transform_5(%arg0: i32) -> (i32, i32) {
    %c0_i32 = arith.constant 0 : i32
    %c0_i32_0 = arith.constant 0 : i32
    %c0_i32_1 = arith.constant 0 : i32
    return %c0_i32, %c0_i32_0 : i32, i32
  }
  func.func @transform_6(%arg0: i32) -> (i32, i32) {
    %c0_i32 = arith.constant 0 : i32
    %c0_i32_0 = arith.constant 0 : i32
    %c0_i32_1 = arith.constant 0 : i32
    return %c0_i32, %c0_i32_0 : i32, i32
  }
  func.func @transform_7(%arg0: i32) -> (i32, i32) {
    %c0_i32 = arith.constant 0 : i32
    %c0_i32_0 = arith.constant 0 : i32
    return %c0_i32, %arg0 : i32, i32
  }
}

</mosaic_0001>

<bundles_post_ra>
// kernel: tpu_custom_call.1
= control target key start
LH: loop header
LB: loop body
LE: loop exit
PB: predicated region body
PF: predicated region fallthrough
CT: control target
= control target key end

     0   :  { %s594_s0 = inlined_call_operand.vmem [shape: bf16[16,128], index: 0, kind: input, shape index: {}]   ;;  %s595_s1 = inlined_call_operand.vmem [shape: bf16[64,16], index: 1, kind: input, shape index: {}]   ;;  %s596_s2 = inlined_call_operand.vmem [shape: f32[64,1], index: 2, kind: input, shape index: {}]   ;;  %s597_s3 = inlined_call_operand.vmem [shape: bf16[32,64], index: 3, kind: input, shape index: {}]   ;;  %s598_s4 = inlined_call_operand.vmem [shape: f32[32,1], index: 4, kind: input, shape index: {}]   ;;  %s599_s5 = inlined_call_operand.vmem [shape: bf16[1,32], index: 5, kind: input, shape index: {}]   ;;  %s600_s6 = inlined_call_operand.<no memory space> [shape: f32[1,1], index: 6, kind: input, shape index: {}]   ;;  %s601_s7 = inlined_call_operand.hbm [shape: f32[1,128], index: 7, kind: output, shape index: {}]  }
   0x1   :  { %v12_v0 = vstv %s600_s6 }
   0x2   :  { %13 = vst [vmem:[#allocation2] sm:$0x1] %v12_v0 }
   0x3   :  { %v438_v1 = vld [vmem:[%s594_s0] sm:$0xff]   ;;  %vm114_vm0 = vcmask 130048   ;;  %v440_v3 = vld [vmem:[%s595_s1 + $0x8] sm:$0xff]   ;;  %v469_v4 = vmov 0   ;;  %v441_v5 = vld [vmem:[%s595_s1 + $0x10] sm:$0xff]  }
   0x4   :  { %v439_v2 = vld [vmem:[%s595_s1] sm:$0xff]   ;;  %402 = vmatprep.subr.bf16.mxu0 %v438_v1  ;;  %436 = vset.pattern.permute.xlu0 %v469_v4  ;;  %v42_v7 = vld [vmem:[%s596_s2 + $0x10] sm:$0xff]  ;;  %v41_v8 = vld [vmem:[%s596_s2 + $0x8] sm:$0xff] }
   0x5   :  { %403 = vmatpush3.bf16.msra.mxu0 %v438_v1  ;;  %404 = vmatprep.mubr.msk.bf16.mxu0 %vm114_vm0, %v439_v2  ;;  %v40_v6 = vld [vmem:[%s596_s2] sm:$0xff]  ;;  %v43_v9 = vld [vmem:[%s596_s2 + $0x18] sm:$0xff] }
   0x6   :  { %437 = vset.pattern.permute.xlu1 %v469_v4  ;;  %50 = vperm.xlu0 %436, %v40_v6   ;;  %v442_v10 = vld [vmem:[%s595_s1 + $0x18] sm:$0xff]  }
   0x7   :  { %60 = vperm.xlu1 %437, %v42_v7  }
   0x8   :  { %405 = vmatmul.mubr.msk.bf16.vlgmr.msra.gmra.mrb[0].mxu0 %vm114_vm0, %v440_v3 }
   0x9   :  { %408 = vmatprep.mubr.msk.bf16.mxu0 %vm114_vm0, %v441_v5 }
   0xa   :  { %55 = vperm.xlu0 %436, %v41_v8  }
   0xb   :  { %14 = vsyncpa [#allocation4], 0  ;;  %v44_v11 = vld [vmem:[%s596_s2 + $0x20] sm:$0xff]  ;;  %65 = vperm.xlu1 %437, %v43_v9   ;;  %v45_v12 = vld [vmem:[%s596_s2 + $0x28] sm:$0xff]  ;;  %vm242_vm1 = vcmask 523264   ;;  %v470_v58 = vmov 0.0  }
   0xc   :  { %v46_v13 = vld [vmem:[%s596_s2 + $0x30] sm:$0xff]  ;;  %v47_v14 = vld [vmem:[%s596_s2 + $0x38] sm:$0xff]  ;;  %v208_v15 = vld [vmem:[%s598_s4] sm:$0xff]  ;;  %424 = vmatprep.subr.bf16.mxu0 %v470_v58  ;;  %vm471_vm2 = vmmov 0   ;;  %vm315_vm3 = vcmask 261120   ;;  %s472_s12 = smov [#allocation3]  }
   0xd   :  { %v209_v16 = vld [vmem:[%s598_s4 + $0x8] sm:$0xff]  ;;  %v210_v17 = vld [vmem:[%s598_s4 + $0x10] sm:$0xff]  ;;  %v211_v18 = vld [vmem:[%s598_s4 + $0x18] sm:$0xff]  ;;  %s366_s13 = sshll.u32 %s472_s12, 4  ;;  %s367_s13 = int_to_ptr.vmem [resolvable:$true] %s366_s13 }
   0xe   :  { %70 = vperm.xlu0 %436, %v44_v11   ;;  %v305_v19 = vld [vmem:[#allocation2] sm:$0x1]  ;;  %v444_v57 = vld [vmem:[%s597_s3 + $0x8] sm:$0xff]   ;;  %s445_s14 = scalar_lea.vmem %s367_s13, 16  ;;  %s449_s15 = scalar_lea.vmem %s367_s13, 32 }
   0xf   :  { %75 = vperm.xlu1 %437, %v45_v12   ;;  %v443_v20 = vld [vmem:[%s597_s3] sm:$0xff]   ;;  %p446_p0 = scmp.ne.s32.totalorder %s367_s13, %s445_s14  ;;  %p450_p1 = scmp.lt.s32.totalorder %s367_s13, %s367_s13 }
  0x10   :  { %409 = vmatmul.mubr.msk.bf16.gmra.mrb[4].mxu0 %vm114_vm0, %v442_v10  ;;  %420 = vmatprep.mubr.msk.bf16.mxu1 %vm242_vm1, %v443_v20  ;;  %p451_p2 = scmp.lt.s32.totalorder %s449_s15, %s445_s14 }
  0x11   :  { %428 = vmatprep.mubr.msk.bf16.mxu0 %vm471_vm2, %v470_v58 }
  0x12   :  { %80 = vperm.xlu0 %436, %v46_v13   ;;  %v304_v13 = vld [vmem:[%s599_s5] sm:$0x1]  ;;  %p452_p3 = por %p451_p2, %p450_p1 }
  0x13   :  { %85 = vperm.xlu1 %437, %v47_v14   ;;  %v311_v14 = vlaneseq }
  0x14   :  { %p453_p4 = pnand %p452_p3, %p446_p0 }
  0x16   :  { %214 = vperm.xlu0 %436, %v208_v15   ;;  %v312_v15 = vshrl.u32 %v311_v14, 7 }
  0x17   :  { %219 = vperm.xlu1 %437, %v209_v16  }
  0x18   :  { %v313_v16 = vsub.s32 0, %v312_v15 }
  0x1a   :  { %224 = vperm.xlu0 %436, %v210_v17  }
  0x1b   :  { %229 = vperm.xlu1 %437, %v211_v18  }
  0x1e   :  { %308 = vperm.xlu0 %436, %v305_v19  }
  0x85   :  { %v51_v21 = vpop.permute.xlu0 %50 }
  0x86   :  { %v61_v22 = vpop.permute.xlu1 %60 }
  0x89   :  { %v56_v23 = vpop.permute.xlu0 %55 }
  0x8a   :  { %v66_v24 = vpop.permute.xlu1 %65 }
  0x8d   :  { %v71_v28 = vpop.permute.xlu0 %70 }
  0x8e   :  { %v76_v33 = vpop.permute.xlu1 %75 }
  0x91   :  { %v81_v40 = vpop.permute.xlu0 %80 }
  0x92   :  { %v86_v45 = vpop.permute.xlu1 %85 }
  0x95   :  { %v215_v59 = vpop.permute.xlu0 %214 }
  0x96   :  { %v220_v60 = vpop.permute.xlu1 %219 }
  0x99   :  { %v225_v61 = vpop.permute.xlu0 %224 }
  0x9a   :  { %v230_v1 = vpop.permute.xlu1 %229 }
  0x9d   :  { %v309_v17 = vpop.permute.xlu0 %308 }
  0x9e   :  { %v314_v18 = vrot.slane %v309_v17, %v313_v16 }
  0xdb   :  { %v406_v25 = vpop.f32.mrb[0].mxu0 }
  0xdc   :  { %v170_v26 = vadd.f32 %v406_v25, %v61_v22  ;;  %v161_v27 = vpop.f32.mrb[1].mxu0 }
  0xdd   :  { %v162_v29 = vadd.f32 %v161_v27, %v51_v21  ;;  %v407_v30 = vpop.f32.mrb[2].mxu0 }
  0xde   :  { %v173_v31 = vadd.f32 %v407_v30, %v66_v24  ;;  %v164_v32 = vpop.f32.mrb[3].mxu0  ;;  %v194_v35 = vmax.f32 %v170_v26, 0.0 }
  0xdf   :  { %v165_v34 = vadd.f32 %v164_v32, %v56_v23  ;;  %v192_v37 = vmax.f32 %v162_v29, 0.0 }
  0xe0   :  { %v195_v36 = vmax.f32 %v173_v31, 0.0 }
  0xe1   :  { %v193_v38 = vmax.f32 %v165_v34, 0.0 }
  0xe2   :  { %v201_v39 = vpack.c.bf16 %v195_v36, %v194_v35 }
  0xe3   :  { %v410_v41 = vpop.f32.mrb[4].mxu0  ;;  %v200_v42 = vpack.c.bf16 %v193_v38, %v192_v37 }
  0xe4   :  { %v186_v43 = vadd.f32 %v410_v41, %v81_v40  ;;  %v177_v44 = vpop.f32.mrb[5].mxu0 }
  0xe5   :  { %v178_v46 = vadd.f32 %v177_v44, %v71_v28  ;;  %v411_v47 = vpop.f32.mrb[6].mxu0  ;;  %412 = vmatprep.subr.bf16.mxu1 %v200_v42 }
  0xe6   :  { %v189_v48 = vadd.f32 %v411_v47, %v86_v45  ;;  %v180_v49 = vpop.f32.mrb[7].mxu0  ;;  %413 = vmatpush3.bf16.msra.mxu1 %v200_v42  ;;  %v198_v51 = vmax.f32 %v186_v43, 0.0 }
  0xe7   :  { %v181_v50 = vadd.f32 %v180_v49, %v76_v33  ;;  %414 = vmatprep.subr.bf16.mxu1 %v201_v39  ;;  %v196_v53 = vmax.f32 %v178_v46, 0.0 }
  0xe8   :  { %v199_v52 = vmax.f32 %v189_v48, 0.0 }
  0xe9   :  { %v197_v54 = vmax.f32 %v181_v50, 0.0 }
  0xea   :  { %v203_v55 = vpack.c.bf16 %v199_v52, %v198_v51  ;;  %415 = vmatpush3.bf16.msra.mxu1 %v201_v39 }
  0xeb   :  { %v202_v56 = vpack.c.bf16 %v197_v54, %v196_v53 }
  0xed   :  { %416 = vmatprep.subr.bf16.mxu1 %v202_v56 }
  0xee   :  { %417 = vmatpush3.bf16.msra.mxu1 %v202_v56 }
  0xef   :  { %418 = vmatprep.subr.bf16.mxu1 %v203_v55 }
  0xf2   :  { %419 = vmatpush3.bf16.msra.mxu1 %v203_v55 }
  0xf5   :  { %421 = vmatmul.mubr.msk.bf16.vlgmr.msra.gmra.mrb[0].mxu1 %vm242_vm1, %v444_v57 }
 0x1c8   :  { %v422_v62 = vpop.f32.mrb[0].mxu1 }
 0x1c9   :  { %v292_v63 = vadd.f32 %v422_v62, %v225_v61  ;;  %v283_v0 = vpop.f32.mrb[1].mxu1 }
 0x1ca   :  { %v284_v2 = vadd.f32 %v283_v0, %v215_v59  ;;  %v423_v3 = vpop.f32.mrb[2].mxu1 }
 0x1cb   :  { %v295_v4 = vadd.f32 %v423_v3, %v230_v1  ;;  %v286_v5 = vpop.f32.mrb[3].mxu1  ;;  %v300_v7 = vmax.f32 %v292_v63, 0.0 }
 0x1cc   :  { %v287_v6 = vadd.f32 %v286_v5, %v220_v60  ;;  %v298_v9 = vmax.f32 %v284_v2, 0.0 }
 0x1cd   :  { %v301_v8 = vmax.f32 %v295_v4, 0.0 }
 0x1ce   :  { %v299_v10 = vmax.f32 %v287_v6, 0.0 }
 0x1cf   :  { %v303_v11 = vpack.c.bf16 %v301_v8, %v300_v7 }
 0x1d0   :  { %v302_v12 = vpack.c.bf16 %v299_v10, %v298_v9 }
 0x1d2   :  { %425 = vmatpush3.bf16.msra.mxu0 %v302_v12 }
 0x1d3   :  { %426 = vmatprep.subr.bf16.mxu0 %v470_v58 }
 0x1d6   :  { %427 = vmatpush3.bf16.msra.mxu0 %v303_v11 }
 0x1d9   :  { %429 = vmatmul.mubr.msk.bf16.vlgmr.msra.gmra.mrb[8].mxu0 %vm315_vm3, %v304_v13 }
 0x2ac   :  { %v353_v19 = vpop.f32.mrb[8].mxu0 }
 0x2ad   :  { %v354_v20 = vadd.f32 %v353_v19, %v314_v18  ;;  %v430_v21 = vpop.f32.mrb[9].mxu0 }
 0x2ae   :  { %v356_v22 = vpop.f32.mrb[10].mxu0 }
 0x2af   :  { %359 = vst [vmem:[#allocation3] sm:$0x1] %v354_v20  ;;  %v431_v23 = vpop.f32.mrb[11].mxu0 }
 0x2b0   :  { %456 = shalt.err (!%p453_p4)
}
 0x2b1   :  { %s457_s17 = scalar_lea.hbm %s601_s7, 16 }
 0x2b2   :  { %p458_p5 = scmp.ne.s32.totalorder %s601_s7, %s457_s17  ;;  %p461_p6 = scmp.lt.u32.totalorder %s457_s17, %s601_s7 }
 0x2b4   :  { %p463_p7 = pnand %p461_p6, %p458_p5 }
 0x2b6   :  { %466 = shalt.err (!%p463_p7)
}
 0x2b7   :  { %369 = dma.vmem_to_hbm [thread:$0]  %s367_s13, 16, %s601_s7, [#allocation4]  }
 0x2b8   :  { %467 = dma.done.wait [#allocation4], 16  }
 0x2b9   :  { %468 = vsyncadd [#allocation4], 4294967280 }
 0x2ba   :  { %373 = vsyncpa [#allocation4], 1 }

</bundles_post_ra>
